<compile_context>
chip_gen: v7x
topology: tpu7x:2x2x1
jax: 0.10.0
libtpu: 0.0.40
codegen_flags: <defaults>
</compile_context>

<pallas_src>
import jax
import jax.numpy as jnp
from jax.experimental import pallas as pl
from jax.experimental.pallas import tpu as pltpu


# ----------------------------------------------------------------------------
# GRL: forward passthrough, backward = -coeff * g (tiled Pallas kernel)
# ----------------------------------------------------------------------------

_LANE = 512                      # lane width (multiple of 128) -> unmasked vst
_TILE_ROWS = 256                 # 256 x 512 x 4B = 512 KiB per f32 tile
_PALLAS_MIN_ELEMS = _TILE_ROWS * _LANE   # below one tile, plain JAX wins


def _scale_kernel(scale_ref, g_ref, o_ref):
    # Backward hot path: dx = scale * dy, scale = -coeff (negation folded on host).
    s = scale_ref[0]                                   # f32 SMEM scalar
    o_ref[...] = (g_ref[...].astype(jnp.float32) * s).astype(o_ref.dtype)


def _reverse_grad_pallas(g, coeff):
    """dx = -coeff * g via a lane-dense, row-tiled, pipelined Pallas kernel."""
    orig_shape, orig_dtype = g.shape, g.dtype
    n = g.size
    flat = g.reshape(-1)

    # Pad only up to a multiple of the lane width; partial last row-tile is
    # handled by Pallas edge-block masking (out-of-bounds writes discarded).
    n_pad = pl.cdiv(n, _LANE) * _LANE
    if n_pad != n:
        flat = jnp.pad(flat, (0, n_pad - n))
    g2 = flat.reshape(-1, _LANE)
    rows = g2.shape[0]

    scale = (-coeff).astype(jnp.float32).reshape(1)    # fold negation, keep f32

    out2 = pl.pallas_call(
        _scale_kernel,
        out_shape=jax.ShapeDtypeStruct(g2.shape, orig_dtype),
        grid=(pl.cdiv(rows, _TILE_ROWS),),
        in_specs=[
            pl.BlockSpec(memory_space=pltpu.MemorySpace.SMEM),     # scale scalar
            pl.BlockSpec((_TILE_ROWS, _LANE), lambda i: (i, 0)),   # grad tiles
        ],
        out_specs=pl.BlockSpec((_TILE_ROWS, _LANE), lambda i: (i, 0)),
        compiler_params=pltpu.CompilerParams(
            # Parallel row axis: sharded across both TensorCores on v7x,
            # harmless no-op on v5e/v6e.
            dimension_semantics=("parallel",)),
    )(scale, g2)

    out = out2.reshape(-1)
    if n_pad != n:
        out = out[:n]
    return out.reshape(orig_shape)


def _reverse_grad(g, coeff):
    if g.size < _PALLAS_MIN_ELEMS:
        # Tiny cotangent: per-call kernel overhead dwarfs the work.
        return (g.astype(jnp.float32) * (-coeff)).astype(g.dtype)
    return _reverse_grad_pallas(g, coeff)


@jax.custom_vjp
def _grl(x, coeff):
    # Forward semantics of GradientReverseFunction: output = input * 1.0.
    # Zero-copy passthrough (no kernel, no HBM round trip).
    return x


def _grl_fwd(x, coeff):
    return x, coeff


def _grl_bwd(coeff, g):
    return _reverse_grad(g, coeff), jnp.zeros_like(coeff)


_grl.defvjp(_grl_fwd, _grl_bwd)


def grl(x, coeff=1.0):
    """GRL_Layer: identity forward, gradient reversal (-coeff) backward."""
    return _grl(x, jnp.asarray(coeff, dtype=jnp.float32))


# ----------------------------------------------------------------------------
# Classifier head: BN1d -> ReLU -> Linear -> BN1d -> ReLU -> Linear (fused)
# ----------------------------------------------------------------------------

_BN_EPS = 1e-5


def _classifier_kernel(x_ref, g1_ref, be1_ref, w1_ref, b1_ref,
                       g2_ref, be2_ref, w2_ref, b2_ref, o_ref):
    eps = jnp.float32(_BN_EPS)
    x = x_ref[...].astype(jnp.float32)

    # BatchNorm1d(in_dim), training-mode batch statistics (biased variance).
    m1 = jnp.mean(x, axis=0, keepdims=True)
    v1 = jnp.mean(jnp.square(x - m1), axis=0, keepdims=True)
    h = (x - m1) * jax.lax.rsqrt(v1 + eps) * g1_ref[...] + be1_ref[...]
    h = jnp.maximum(h, 0.0)                                         # ReLU

    # Linear(in_dim, 100)  (MXU)
    h = jnp.dot(h, w1_ref[...], preferred_element_type=jnp.float32) + b1_ref[...]

    # BatchNorm1d(100)
    m2 = jnp.mean(h, axis=0, keepdims=True)
    v2 = jnp.mean(jnp.square(h - m2), axis=0, keepdims=True)
    h = (h - m2) * jax.lax.rsqrt(v2 + eps) * g2_ref[...] + be2_ref[...]
    h = jnp.maximum(h, 0.0)                                         # ReLU

    # Linear(100, camids)  (MXU)
    out = jnp.dot(h, w2_ref[...], preferred_element_type=jnp.float32) + b2_ref[...]
    o_ref[...] = out.astype(o_ref.dtype)


def _classifier_pallas(x, params):
    g1, be1, w1, b1, g2, be2, w2, b2 = params
    b_sz, in_dim = x.shape
    hidden = w1.shape[1]
    camids = w2.shape[1]
    # Whole-array blocks (everything fits VMEM comfortably for this head).
    return pl.pallas_call(
        _classifier_kernel,
        out_shape=jax.ShapeDtypeStruct((b_sz, camids), x.dtype),
    )(x,
      g1.reshape(1, in_dim), be1.reshape(1, in_dim),
      w1, b1.reshape(1, hidden),
      g2.reshape(1, hidden), be2.reshape(1, hidden),
      w2, b2.reshape(1, camids))


def domain_classifier_forward(feature, params, coeff=1.0):
    """domain_classfier.forward: GRL (identity fwd) then the fused classifier."""
    grl_feature = grl(feature, coeff)
    return _classifier_pallas(grl_feature, params)


def _classifier_ref(x, params):
    """Pure-JAX reference of the classifier math (for correctness check)."""
    g1, be1, w1, b1, g2, be2, w2, b2 = params
    m1 = jnp.mean(x, axis=0, keepdims=True)
    v1 = jnp.mean(jnp.square(x - m1), axis=0, keepdims=True)
    h = (x - m1) * jax.lax.rsqrt(v1 + _BN_EPS) * g1 + be1
    h = jnp.maximum(h, 0.0)
    h = h @ w1 + b1
    m2 = jnp.mean(h, axis=0, keepdims=True)
    v2 = jnp.mean(jnp.square(h - m2), axis=0, keepdims=True)
    h = (h - m2) * jax.lax.rsqrt(v2 + _BN_EPS) * g2 + be2
    h = jnp.maximum(h, 0.0)
    return h @ w2 + b2


# ----------------------------------------------------------------------------
# Self-test
# ----------------------------------------------------------------------------

if __name__ == "__main__":
    key = jax.random.PRNGKey(0)
    B, IN_DIM, HIDDEN, CAMIDS = 8, 32, 100, 6
    coeff = 0.5

    k_feat, k_g1, k_w1, k_g2, k_w2 = jax.random.split(key, 5)
    feature = jax.random.normal(k_feat, (B, IN_DIM), dtype=jnp.float32)

    # Parameters per weights_init_kaiming:
    #   BatchNorm: weight ~ N(1.0, 0.02), bias = 0
    #   Linear:    weight ~ N(0, 0.001),  bias = 0
    # (Linear weights stored as [in, out]; random init so orientation is moot.)
    g1 = 1.0 + 0.02 * jax.random.normal(k_g1, (IN_DIM,), jnp.float32)
    be1 = jnp.zeros((IN_DIM,), jnp.float32)
    w1 = 0.001 * jax.random.normal(k_w1, (IN_DIM, HIDDEN), jnp.float32)
    b1 = jnp.zeros((HIDDEN,), jnp.float32)
    g2 = 1.0 + 0.02 * jax.random.normal(k_g2, (HIDDEN,), jnp.float32)
    be2 = jnp.zeros((HIDDEN,), jnp.float32)
    w2 = 0.001 * jax.random.normal(k_w2, (HIDDEN, CAMIDS), jnp.float32)
    b2 = jnp.zeros((CAMIDS,), jnp.float32)
    params = (g1, be1, w1, b1, g2, be2, w2, b2)

    # Full module forward through the fused classifier Pallas kernel.
    out = jax.block_until_ready(domain_classifier_forward(feature, params, coeff))
    assert out.shape == (B, CAMIDS) and out.dtype == feature.dtype
    ref = _classifier_ref(feature, params)   # GRL is identity in the forward
    assert jnp.allclose(out, ref, atol=1e-5, rtol=1e-5), "classifier mismatch"

    # GRL semantics, small input (pure-JAX backward fallback path).
    y_small = grl(feature, coeff)
    assert jnp.allclose(y_small, feature), "GRL forward must be identity"
    dx_small = jax.grad(lambda a: jnp.sum(grl(a, coeff)))(feature)
    assert jnp.allclose(dx_small, -coeff * jnp.ones_like(feature))

    # Larger gradients exercise the tiled, lane-dense Pallas backward kernel:
    # one lane/tile-aligned case and one padded (ragged) case.
    for shp in ((256, 2048), (300, 513)):
        xb = jax.random.normal(jax.random.fold_in(key, shp[0]), shp, jnp.float32)
        dxb = jax.block_until_ready(
            jax.grad(lambda a: jnp.sum(grl(a, coeff)))(xb))
        assert dxb.shape == shp
        assert jnp.allclose(dxb, -coeff * jnp.ones_like(xb)), f"GRL bwd {shp}"

    print("KERNEL_OK")
</pallas_src>

<mosaic_0001>
module attributes {stable_mosaic.version = 11 : i64} {
  func.func @_classifier_kernel(%arg0: memref<8x32xf32, #tpu.memory_space<vmem>>, %arg1: memref<1x32xf32, #tpu.memory_space<vmem>>, %arg2: memref<1x32xf32, #tpu.memory_space<vmem>>, %arg3: memref<32x100xf32, #tpu.memory_space<vmem>>, %arg4: memref<1x100xf32, #tpu.memory_space<vmem>>, %arg5: memref<1x100xf32, #tpu.memory_space<vmem>>, %arg6: memref<1x100xf32, #tpu.memory_space<vmem>>, %arg7: memref<100x6xf32, #tpu.memory_space<vmem>>, %arg8: memref<1x6xf32, #tpu.memory_space<vmem>>, %arg9: memref<8x6xf32, #tpu.memory_space<vmem>>) attributes {dimension_semantics = [], scalar_prefetch = 0 : i64, scratch_operands = 0 : i64, tpu.core_type = #tpu.core_type<tc>} {
    %c0 = arith.constant 0 : index
    %c0_0 = arith.constant 0 : index
    %0 = vector.load %arg0[%c0, %c0_0] : memref<8x32xf32, #tpu.memory_space<vmem>>, vector<8x32xf32>
    %cst = arith.constant dense<0.000000e+00> : vector<32xf32>
    %1 = vector.multi_reduction <add>, %0, %cst [0] : vector<8x32xf32> to vector<32xf32>
    %2 = vector.shape_cast %1 : vector<32xf32> to vector<1x32xf32>
    %cst_1 = arith.constant 8.000000e+00 : f32
    %3 = vector.broadcast %cst_1 : f32 to vector<1x32xf32>
    %4 = arith.divf %2, %3 : vector<1x32xf32>
    %5 = vector.broadcast %4 : vector<1x32xf32> to vector<8x32xf32>
    %6 = arith.subf %0, %5 : vector<8x32xf32>
    %7 = arith.mulf %6, %6 : vector<8x32xf32>
    %cst_2 = arith.constant dense<0.000000e+00> : vector<32xf32>
    %8 = vector.multi_reduction <add>, %7, %cst_2 [0] : vector<8x32xf32> to vector<32xf32>
    %9 = vector.shape_cast %8 : vector<32xf32> to vector<1x32xf32>
    %cst_3 = arith.constant 8.000000e+00 : f32
    %10 = vector.broadcast %cst_3 : f32 to vector<1x32xf32>
    %11 = arith.divf %9, %10 : vector<1x32xf32>
    %12 = vector.broadcast %4 : vector<1x32xf32> to vector<8x32xf32>
    %13 = arith.subf %0, %12 : vector<8x32xf32>
    %cst_4 = arith.constant 9.99999974E-6 : f32
    %14 = vector.broadcast %cst_4 : f32 to vector<1x32xf32>
    %15 = arith.addf %11, %14 : vector<1x32xf32>
    %16 = math.rsqrt %15 : vector<1x32xf32>
    %17 = vector.broadcast %16 : vector<1x32xf32> to vector<8x32xf32>
    %18 = arith.mulf %13, %17 : vector<8x32xf32>
    %c0_5 = arith.constant 0 : index
    %c0_6 = arith.constant 0 : index
    %19 = vector.load %arg1[%c0_5, %c0_6] : memref<1x32xf32, #tpu.memory_space<vmem>>, vector<1x32xf32>
    %20 = vector.broadcast %19 : vector<1x32xf32> to vector<8x32xf32>
    %21 = arith.mulf %18, %20 : vector<8x32xf32>
    %c0_7 = arith.constant 0 : index
    %c0_8 = arith.constant 0 : index
    %22 = vector.load %arg2[%c0_7, %c0_8] : memref<1x32xf32, #tpu.memory_space<vmem>>, vector<1x32xf32>
    %23 = vector.broadcast %22 : vector<1x32xf32> to vector<8x32xf32>
    %24 = arith.addf %21, %23 : vector<8x32xf32>
    %cst_9 = arith.constant 0.000000e+00 : f32
    %25 = vector.broadcast %cst_9 : f32 to vector<8x32xf32>
    %26 = arith.maximumf %24, %25 : vector<8x32xf32>
    %c0_10 = arith.constant 0 : index
    %c0_11 = arith.constant 0 : index
    %27 = vector.load %arg3[%c0_10, %c0_11] : memref<32x100xf32, #tpu.memory_space<vmem>>, vector<32x100xf32>
    %cst_12 = arith.constant dense<0.000000e+00> : vector<8x100xf32>
    %28 = tpu.matmul %26, %27, %cst_12 {dimension_numbers = #tpu.dot_dimension_numbers<[1], [0], [0], [1], [0, 0, 1, 1], [], []>} : vector<8x32xf32>, vector<32x100xf32>, vector<8x100xf32> -> vector<8x100xf32>
    %c0_13 = arith.constant 0 : index
    %c0_14 = arith.constant 0 : index
    %29 = vector.load %arg4[%c0_13, %c0_14] : memref<1x100xf32, #tpu.memory_space<vmem>>, vector<1x100xf32>
    %30 = vector.broadcast %29 : vector<1x100xf32> to vector<8x100xf32>
    %31 = arith.addf %28, %30 : vector<8x100xf32>
    %cst_15 = arith.constant dense<0.000000e+00> : vector<100xf32>
    %32 = vector.multi_reduction <add>, %31, %cst_15 [0] : vector<8x100xf32> to vector<100xf32>
    %33 = vector.shape_cast %32 : vector<100xf32> to vector<1x100xf32>
    %cst_16 = arith.constant 8.000000e+00 : f32
    %34 = vector.broadcast %cst_16 : f32 to vector<1x100xf32>
    %35 = arith.divf %33, %34 : vector<1x100xf32>
    %36 = vector.broadcast %35 : vector<1x100xf32> to vector<8x100xf32>
    %37 = arith.subf %31, %36 : vector<8x100xf32>
    %38 = arith.mulf %37, %37 : vector<8x100xf32>
    %cst_17 = arith.constant dense<0.000000e+00> : vector<100xf32>
    %39 = vector.multi_reduction <add>, %38, %cst_17 [0] : vector<8x100xf32> to vector<100xf32>
    %40 = vector.shape_cast %39 : vector<100xf32> to vector<1x100xf32>
    %cst_18 = arith.constant 8.000000e+00 : f32
    %41 = vector.broadcast %cst_18 : f32 to vector<1x100xf32>
    %42 = arith.divf %40, %41 : vector<1x100xf32>
    %43 = vector.broadcast %35 : vector<1x100xf32> to vector<8x100xf32>
    %44 = arith.subf %31, %43 : vector<8x100xf32>
    %cst_19 = arith.constant 9.99999974E-6 : f32
    %45 = vector.broadcast %cst_19 : f32 to vector<1x100xf32>
    %46 = arith.addf %42, %45 : vector<1x100xf32>
    %47 = math.rsqrt %46 : vector<1x100xf32>
    %48 = vector.broadcast %47 : vector<1x100xf32> to vector<8x100xf32>
    %49 = arith.mulf %44, %48 : vector<8x100xf32>
    %c0_20 = arith.constant 0 : index
    %c0_21 = arith.constant 0 : index
    %50 = vector.load %arg5[%c0_20, %c0_21] : memref<1x100xf32, #tpu.memory_space<vmem>>, vector<1x100xf32>
    %51 = vector.broadcast %50 : vector<1x100xf32> to vector<8x100xf32>
    %52 = arith.mulf %49, %51 : vector<8x100xf32>
    %c0_22 = arith.constant 0 : index
    %c0_23 = arith.constant 0 : index
    %53 = vector.load %arg6[%c0_22, %c0_23] : memref<1x100xf32, #tpu.memory_space<vmem>>, vector<1x100xf32>
    %54 = vector.broadcast %53 : vector<1x100xf32> to vector<8x100xf32>
    %55 = arith.addf %52, %54 : vector<8x100xf32>
    %cst_24 = arith.constant 0.000000e+00 : f32
    %56 = vector.broadcast %cst_24 : f32 to vector<8x100xf32>
    %57 = arith.maximumf %55, %56 : vector<8x100xf32>
    %c0_25 = arith.constant 0 : index
    %c0_26 = arith.constant 0 : index
    %58 = vector.load %arg7[%c0_25, %c0_26] : memref<100x6xf32, #tpu.memory_space<vmem>>, vector<100x6xf32>
    %cst_27 = arith.constant dense<0.000000e+00> : vector<8x6xf32>
    %59 = tpu.matmul %57, %58, %cst_27 {dimension_numbers = #tpu.dot_dimension_numbers<[1], [0], [0], [1], [0, 0, 1, 1], [], []>} : vector<8x100xf32>, vector<100x6xf32>, vector<8x6xf32> -> vector<8x6xf32>
    %c0_28 = arith.constant 0 : index
    %c0_29 = arith.constant 0 : index
    %60 = vector.load %arg8[%c0_28, %c0_29] : memref<1x6xf32, #tpu.memory_space<vmem>>, vector<1x6xf32>
    %61 = vector.broadcast %60 : vector<1x6xf32> to vector<8x6xf32>
    %62 = arith.addf %59, %61 : vector<8x6xf32>
    %c0_30 = arith.constant 0 : index
    %c0_31 = arith.constant 0 : index
    %63 = vector.load %arg9[%c0_30, %c0_31] : memref<8x6xf32, #tpu.memory_space<vmem>>, vector<8x6xf32>
    tpu.vector_store %arg9[%c0_30, %c0_31], %62 {strides = array<i32>} : memref<8x6xf32, #tpu.memory_space<vmem>>, vector<8x6xf32>,
    return
  }
}

</mosaic_0001>

<bundles_post_ra>
// kernel: tpu_custom_call.1
= control target key start
LH: loop header
LB: loop body
LE: loop exit
PB: predicated region body
PF: predicated region fallthrough
CT: control target
= control target key end

     0   :  { %v434_v3 = vmov 0.0|0.0   ;;  %vm435_vm0 = vmmov 0   ;;  %v436_v6 = vmov 0.0   ;;  %vm34_vm1 = vcmask 261120   ;;  %s589_s0 = inlined_call_operand.vmem [shape: f32[8,32], index: 0, kind: input, shape index: {}]   ;;  %s590_s1 = inlined_call_operand.vmem [shape: f32[1,32], index: 1, kind: input, shape index: {}]   ;;  %s591_s2 = inlined_call_operand.vmem [shape: f32[1,32], index: 2, kind: input, shape index: {}]   ;;  %s592_s3 = inlined_call_operand.vmem [shape: f32[32,100], index: 3, kind: input, shape index: {}]   ;;  %s593_s4 = inlined_call_operand.vmem [shape: f32[1,100], index: 4, kind: input, shape index: {}]   ;;  %s594_s5 = inlined_call_operand.vmem [shape: f32[1,100], index: 5, kind: input, shape index: {}]   ;;  %s595_s6 = inlined_call_operand.vmem [shape: f32[1,100], index: 6, kind: input, shape index: {}]   ;;  %s596_s7 = inlined_call_operand.vmem [shape: f32[100,6], index: 7, kind: input, shape index: {}]   ;;  %s597_s8 = inlined_call_operand.vmem [shape: f32[1,6], index: 8, kind: input, shape index: {}]   ;;  %s598_s9 = inlined_call_operand.hbm [shape: f32[8,6], index: 9, kind: output, shape index: {}]  }
   0x1   :  { %v74_v0 = vld [vmem:[%s592_s3] sm:$0xff]  ;;  %v75_v1 = vld [vmem:[%s592_s3 + $0x8] sm:$0xff]  ;;  %v76_v2 = vld [vmem:[%s592_s3 + $0x10] sm:$0xff]  ;;  %378 = vmatprep.subr.bf16.mxu0 %v434_v3  ;;  %346 = vmatprep.mubr.msk.f32.mxu0 %vm435_vm0, %v436_v6 }
   0x2   :  { %v379_v4 = vpack.c.bf16 %v75_v1, %v74_v0  ;;  %v77_v5 = vld [vmem:[%s592_s3 + $0x18] sm:$0xff]  ;;  %v33_v7 = vld [vmem:[%s589_s0] sm:$0xff]  ;;  %384 = vmatprep.subr.bf16.mxu1 %v434_v3  ;;  %375 = vmatprep.mubr.msk.f32.mxu1 %vm435_vm0, %v436_v6 }
   0x3   :  { %v35_v8 = vsel %vm34_vm1, %v33_v7, 0.0  ;;  %v382_v9 = vpack.c.bf16 %v77_v5, %v76_v2 }
   0x4   :  { %380 = vmatpush3.bf16.msra.mxu0 %v379_v4  ;;  %v36_v10 = vrot.slane %v35_v8, 4 }
   0x5   :  { %14 = vsyncpa [#allocation3], 0  ;;  %381 = vmatprep.subr.bf16.mxu0 %v434_v3  ;;  %v310_v29 = vld [vmem:[%s590_s1] ss:$0 sm:$0xff]  ;;  %v198_v36 = vld [vmem:[%s596_s7 + $0x8] sm:$0xff]  ;;  %vm220_vm2 = vcmask 1043456  }
   0x6   :  { %v37_v11 = vadd.f32 %v36_v10, %v35_v8  ;;  %v311_v31 = vld [vmem:[%s591_s2] ss:$0 sm:$0xff]  ;;  %v199_v38 = vld [vmem:[%s596_s7 + $0x10] sm:$0xff]  ;;  %v200_v39 = vld [vmem:[%s596_s7 + $0x18] sm:$0xff]  ;;  %vm158_vm3 = vcmask 818176   ;;  %s437_s26 = smov [#allocation2]  }
   0x7   :  { %v197_v35 = vld [vmem:[%s596_s7] sm:$0xff]  ;;  %v388_v40 = vpack.c.bf16 %v200_v39, %v199_v38  ;;  %v202_v42 = vld [vmem:[%s596_s7 + $0x28] sm:$0xff]  ;;  %v203_v44 = vld [vmem:[%s596_s7 + $0x30] sm:$0xff]  ;;  %s302_s27 = sshll.u32 %s437_s26, 4  ;;  %vm294_vm4 = vcmask 48128   ;;  %s303_s27 = int_to_ptr.vmem [resolvable:$true] %s302_s27 }
   0x8   :  { %383 = vmatpush3.bf16.msra.mxu0 %v382_v9  ;;  %v38_v12 = vrot.slane %v37_v11, 2  ;;  %v385_v37 = vpack.c.bf16 %v198_v36, %v197_v35  ;;  %v201_v41 = vld [vmem:[%s596_s7 + $0x20] sm:$0xff]  ;;  %v204_v45 = vld [vmem:[%s596_s7 + $0x38] sm:$0xff]  ;;  %v206_v48 = vld [vmem:[%s596_s7 + $0x48] sm:$0xff]  ;;  %p415_p1 = scmp.lt.s32.totalorder %s303_s27, %s303_s27 }
   0x9   :  { %v391_v43 = vpack.c.bf16 %v202_v42, %v201_v41  ;;  %v394_v46 = vpack.c.bf16 %v204_v45, %v203_v44  ;;  %v205_v47 = vld [vmem:[%s596_s7 + $0x40] sm:$0xff]  ;;  %v207_v50 = vld [vmem:[%s596_s7 + $0x50] sm:$0xff]  ;;  %v208_v51 = vld [vmem:[%s596_s7 + $0x58] sm:$0xff] }
   0xa   :  { %v39_v13 = vadd.f32 %v38_v12, %v37_v11  ;;  %386 = vmatpush3.bf16.msra.mxu1 %v385_v37  ;;  %v397_v49 = vpack.c.bf16 %v206_v48, %v205_v47  ;;  %v400_v52 = vpack.c.bf16 %v208_v51, %v207_v50  ;;  %v209_v53 = vld [vmem:[%s596_s7 + $0x60] sm:$0xf] }
   0xb   :  { %387 = vmatprep.subr.bf16.mxu1 %v434_v3  ;;  %v312_v54 = vld [vmem:[%s593_s4] ss:$0 sm:$0xff] }
   0xc   :  { %v40_v14 = vrot.slane %v39_v13, 1 }
   0xe   :  { %v41_v15 = vadd.f32 %v40_v14, %v39_v13  ;;  %389 = vmatpush3.bf16.msra.mxu1 %v388_v40  ;;  %v314_v14 = vld [vmem:[%s594_s5] ss:$0 sm:$0xff]  ;;  %s410_s5 = scalar_lea.vmem %s303_s27, 128 }
   0xf   :  { %390 = vmatprep.subr.bf16.mxu1 %v434_v3  ;;  %p411_p0 = scmp.ne.s32.totalorder %s303_s27, %s410_s5  ;;  %p416_p2 = scmp.lt.s32.totalorder %s410_s5, %s410_s5 }
  0x10   :  { %v43_v16 = vmul.f32 0.125, %v41_v15 }
  0x11   :  { %p417_p3 = por %p416_p2, %p415_p1 }
  0x12   :  { %v44_v17 = vsub.f32 %v33_v7, %v43_v16  ;;  %392 = vmatpush3.bf16.msra.mxu1 %v391_v43  ;;  %v315_v16 = vld [vmem:[%s595_s6] ss:$0 sm:$0xff] }
  0x13   :  { %393 = vmatprep.subr.bf16.mxu1 %v434_v3  ;;  %p418_p4 = pnand %p417_p3, %p411_p0 }
  0x14   :  { %v45_v18 = vmul.f32 %v44_v17, %v44_v17 }
  0x16   :  { %v46_v19 = vsel %vm34_vm1, %v45_v18, 0.0  ;;  %395 = vmatpush3.bf16.msra.mxu1 %v394_v46 }
  0x17   :  { %v47_v20 = vrot.slane %v46_v19, 4  ;;  %396 = vmatprep.subr.bf16.mxu1 %v434_v3 }
  0x19   :  { %v48_v21 = vadd.f32 %v47_v20, %v46_v19  ;;  %v316_v20 = vld [vmem:[%s597_s8] ss:$0 sm:$0xff] }
  0x1a   :  { %398 = vmatpush3.bf16.msra.mxu1 %v397_v49 }
  0x1b   :  { %v49_v22 = vrot.slane %v48_v21, 2  ;;  %399 = vmatprep.subr.bf16.mxu1 %v434_v3 }
  0x1d   :  { %v50_v23 = vadd.f32 %v49_v22, %v48_v21 }
  0x1e   :  { %401 = vmatpush3.bf16.msra.mxu1 %v400_v52 }
  0x1f   :  { %v51_v24 = vrot.slane %v50_v23, 1  ;;  %373 = vmatprep.subr.mxu1 %v436_v6 }
  0x21   :  { %v52_v25 = vadd.f32 %v51_v24, %v50_v23 }
  0x22   :  { %374 = vmatpush3.msk.msra.mxu1 %vm220_vm2, %v209_v53 }
  0x23   :  { %v53_v26 = vmul.f32 0.125, %v52_v25 }
  0x25   :  { %v54_v27 = vadd.f32 1e-05, %v53_v26 }
  0x27   :  { %406 = vrsqrt.f32 %v54_v27 }
  0x31   :  { %v407_v28 = vpop.eup %406 }
  0x32   :  { %v56_v30 = vmul.f32 %v407_v28, %v44_v17 }
  0x34   :  { %v64_v32 = vmul.f32 %v310_v29, %v56_v30 }
  0x36   :  { %v72_v33 = vadd.f32 %v311_v31, %v64_v32 }
  0x38   :  { %v73_v34 = vmax.f32 %v72_v33, 0.0 }
  0x3a   :  { %347 = vmatmul.mubr.msk.f32.vlgmr.msra.gmra.mrb[0].mxu0 %vm34_vm1, %v73_v34 }
 0x10d   :  { %v154_v55 = vpop.f32.mrb[0].mxu0 }
 0x10e   :  { %v155_v56 = vadd.f32 %v312_v54, %v154_v55  ;;  %v348_v57 = vpop.f32.mrb[1].mxu0 }
 0x110   :  { %v159_v58 = vsel %vm158_vm3, %v155_v56, 0.0 }
 0x111   :  { %v160_v59 = vrot.slane %v159_v58, 4 }
 0x113   :  { %v161_v60 = vadd.f32 %v160_v59, %v159_v58 }
 0x115   :  { %v162_v61 = vrot.slane %v161_v60, 2 }
 0x117   :  { %v163_v62 = vadd.f32 %v162_v61, %v161_v60 }
 0x119   :  { %v164_v63 = vrot.slane %v163_v62, 1 }
 0x11b   :  { %v165_v0 = vadd.f32 %v164_v63, %v163_v62 }
 0x11d   :  { %v166_v1 = vmul.f32 0.125, %v165_v0 }
 0x11f   :  { %v167_v2 = vsub.f32 %v155_v56, %v166_v1 }
 0x121   :  { %v168_v3 = vmul.f32 %v167_v2, %v167_v2 }
 0x123   :  { %v169_v4 = vsel %vm158_vm3, %v168_v3, 0.0 }
 0x124   :  { %v170_v5 = vrot.slane %v169_v4, 4 }
 0x126   :  { %v171_v6 = vadd.f32 %v170_v5, %v169_v4 }
 0x128   :  { %v172_v7 = vrot.slane %v171_v6, 2 }
 0x12a   :  { %v173_v8 = vadd.f32 %v172_v7, %v171_v6 }
 0x12c   :  { %v174_v9 = vrot.slane %v173_v8, 1 }
 0x12e   :  { %v175_v10 = vadd.f32 %v174_v9, %v173_v8 }
 0x130   :  { %v176_v11 = vmul.f32 0.125, %v175_v10 }
 0x132   :  { %v177_v12 = vadd.f32 1e-05, %v176_v11 }
 0x134   :  { %408 = vrsqrt.f32 %v177_v12 }
 0x13e   :  { %v409_v13 = vpop.eup %408 }
 0x13f   :  { %v179_v15 = vmul.f32 %v409_v13, %v167_v2 }
 0x141   :  { %v187_v17 = vmul.f32 %v314_v14, %v179_v15 }
 0x143   :  { %v195_v18 = vadd.f32 %v315_v16, %v187_v17 }
 0x145   :  { %v196_v19 = vmax.f32 %v195_v18, 0.0 }
 0x147   :  { %376 = vmatmul.mubr.msk.f32.vlgmr.msra.gmra.mrb[0].mxu1 %vm158_vm3, %v196_v19 }
 0x21a   :  { %v290_v21 = vpop.f32.mrb[0].mxu1 }
 0x21b   :  { %v291_v22 = vadd.f32 %v316_v20, %v290_v21  ;;  %v377_v23 = vpop.f32.mrb[1].mxu1 }
 0x21d   :  { %295 = vst.msk [vmem:[#allocation2] sm:$0xff] %vm294_vm4, %v291_v22 }
 0x21e   :  { %421 = shalt.err (!%p418_p4)
}
 0x21f   :  { %s422_s29 = scalar_lea.hbm %s598_s9, 128 }
 0x220   :  { %p423_p5 = scmp.ne.s32.totalorder %s598_s9, %s422_s29  ;;  %p426_p6 = scmp.lt.u32.totalorder %s422_s29, %s598_s9 }
 0x222   :  { %p428_p7 = pnand %p426_p6, %p423_p5 }
 0x224   :  { %431 = shalt.err (!%p428_p7)
}
 0x225   :  { %305 = dma.vmem_to_hbm [thread:$0]  %s303_s27, 128, %s598_s9, [#allocation3]  }
 0x226   :  { %432 = dma.done.wait [#allocation3], 128  }
 0x227   :  { %433 = vsyncadd [#allocation3], 4294967168 }
 0x228   :  { %309 = vsyncpa [#allocation3], 1 }

</bundles_post_ra>
